<compile_context>
chip_gen: v7x
topology: tpu7x:2x2x1
jax: 0.10.0
libtpu: 0.0.40
codegen_flags: <defaults>
</compile_context>

<pallas_src>
import functools

import jax
import jax.numpy as jnp
from jax.experimental import pallas as pl
from jax.experimental.pallas import tpu as pltpu

LANE = 128                    # TPU lane width
_N_BIG = 5                    # W1..W4 + replicated W5, each (128,128)
P_ROWS = _N_BIG * LANE + 8    # 5 padded weight blocks + 8 parameter rows
_B_ROW0 = _N_BIG * LANE       # first small-parameter row (640)


def _mlp_kernel(x_ref, p_ref, out_ref, *, in_cols, out_cols):
    """Fused 6-layer MLP forward on one batch tile.

    x_ref   : (bt, in_cols)   activations (narrow, un-padded HBM layout)
    p_ref   : (648, 128)      packed parameters (layout in _pack_params)
    out_ref : (bt, out_cols)  narrow output block
    """
    h = x_ref[...]                                          # f32

    # Layer 1: (bt, in_cols) @ (in_cols, 128)  — only the real K rows of the
    # padded W1 block are used (static sublane slice, zero cost).
    w1 = p_ref[0:in_cols, :]
    b1 = p_ref[_B_ROW0 + 0:_B_ROW0 + 1, :]
    h = jnp.maximum(jnp.dot(h, w1, preferred_element_type=jnp.float32) + b1, 0.0)

    # Layers 2-4: full padded (128,128) MXU matmuls (+ bias + ReLU).
    # Padded columns/lanes are exact zeros, so padding stays zero through ReLU.
    for i in range(1, 4):
        w = p_ref[i * LANE:(i + 1) * LANE, :]
        b = p_ref[_B_ROW0 + i:_B_ROW0 + i + 1, :]
        h = jnp.maximum(jnp.dot(h, w, preferred_element_type=jnp.float32) + b, 0.0)

    # Layer 5 (5 -> 1) as one more MXU matmul: w5 is replicated across all 128
    # columns of the packed block, so every lane of `s` holds the same scalar
    # and no cross-lane XLU reduction is needed.
    w5rep = p_ref[4 * LANE:5 * LANE, :]
    b5 = p_ref[_B_ROW0 + 4:_B_ROW0 + 5, :]                  # b5 replicated over lanes
    h5 = jnp.maximum(jnp.dot(h, w5rep, preferred_element_type=jnp.float32) + b5, 0.0)

    # Layer 6 (1 -> output_size): pure VPU elementwise (broadcast mul + add),
    # then a static lane slice down to the narrow output block.
    w6 = p_ref[_B_ROW0 + 5:_B_ROW0 + 6, :]
    b6 = p_ref[_B_ROW0 + 6:_B_ROW0 + 7, :]
    out_full = h5 * w6 + b6                                 # (bt, 128)
    out_ref[...] = out_full[:, :out_cols]


def _pack_params(params):
    """Pack all six layers into one (648, 128) f32 slab (done ONCE at init).

    rows   0..511 : W1..W4, each zero-padded to (128, 128)        (MXU)
    rows 512..639 : W5 (5,1) replicated across all 128 columns    (MXU)
    row       640 : b1   (zero-padded to 128 lanes)
    row       641 : b2
    row       642 : b3
    row       643 : b4
    row       644 : b5 scalar replicated across all 128 lanes
    row       645 : W6 (1, out) as a row vector, zero-padded
    row       646 : b6, zero-padded
    row       647 : zero padding (sublane alignment)
    Zero padding everywhere guarantees padded lanes carry exact zeros through
    the whole forward pass (ReLU(0) == 0).  All dims must be <= 128.
    """
    (w1, b1), (w2, b2), (w3, b3), (w4, b4), (w5, b5), (w6, b6) = params

    def pad_w(w):
        assert w.shape[0] <= LANE and w.shape[1] <= LANE, "dims must be <= 128"
        return jnp.zeros((LANE, LANE), jnp.float32).at[:w.shape[0], :w.shape[1]].set(w)

    def pad_row(v):
        v = jnp.asarray(v, jnp.float32).reshape(-1)
        assert v.shape[0] <= LANE, "dims must be <= 128"
        return jnp.zeros((1, LANE), jnp.float32).at[0, :v.shape[0]].set(v)

    # W5 (5, 1) -> (128, 128) with its column replicated across all 128 lanes.
    assert w5.shape[0] <= LANE and w5.shape[1] == 1
    w5rep = jnp.zeros((LANE, LANE), jnp.float32).at[:w5.shape[0], :].set(
        jnp.broadcast_to(w5[:, 0:1], (w5.shape[0], LANE)))

    b5_rep = jnp.full((1, LANE), jnp.asarray(b5, jnp.float32).reshape(()), jnp.float32)

    rows = [pad_w(w1), pad_w(w2), pad_w(w3), pad_w(w4), w5rep,
            pad_row(b1), pad_row(b2), pad_row(b3), pad_row(b4),
            b5_rep,
            pad_row(w6[0, :]),
            pad_row(b6),
            jnp.zeros((1, LANE), jnp.float32)]
    packed = jnp.concatenate(rows, axis=0)
    assert packed.shape == (P_ROWS, LANE)
    return packed


@functools.partial(jax.jit, static_argnames=("output_size", "batch_tile"))
def neural_network_forward(x, p_packed, *, output_size, batch_tile=512):
    """x: (batch, input_size) f32.  p_packed: (648, 128) slab from _pack_params."""
    batch, input_size = x.shape
    in_cols = max(8, ((input_size + 7) // 8) * 8)   # sublane-aligned K for W1 slice
    out_cols = output_size

    # Batch tiling: big tiles amortize per-step overhead; on v7x keep >= 2 grid
    # steps once the batch is large so both TensorCores get work.
    bp0 = ((batch + 7) // 8) * 8
    bt = min(batch_tile, bp0)
    if bp0 >= 1024 and bp0 // bt < 2:
        bt = (bp0 + 1) // 2
    bt = ((bt + 7) // 8) * 8
    bp = ((bp0 + bt - 1) // bt) * bt

    # Narrow (non-lane-padded) activation slab: only the real columns hit HBM.
    x_pad = jnp.zeros((bp, in_cols), jnp.float32).at[:batch, :input_size].set(x)

    kernel = functools.partial(_mlp_kernel, in_cols=in_cols, out_cols=out_cols)
    out = pl.pallas_call(
        kernel,
        out_shape=jax.ShapeDtypeStruct((bp, out_cols), jnp.float32),
        grid=(bp // bt,),
        in_specs=[
            pl.BlockSpec((bt, in_cols), lambda i: (i, 0)),       # activations
            pl.BlockSpec((P_ROWS, LANE), lambda i: (0, 0)),      # packed params (resident)
        ],
        out_specs=pl.BlockSpec((bt, out_cols), lambda i: (i, 0)),
        compiler_params=pltpu.CompilerParams(
            dimension_semantics=("parallel",)),
    )(x_pad, p_packed)

    return out[:batch, :]


def init_params(key, input_size, hidden_size, output_size):
    """Deterministic PyTorch-style uniform(-1/sqrt(fan_in), 1/sqrt(fan_in)) init."""
    dims = [(input_size, hidden_size),
            (hidden_size, hidden_size),
            (hidden_size, hidden_size),
            (hidden_size, 5),
            (5, 1),
            (1, output_size)]
    params = []
    for (fan_in, fan_out) in dims:
        key, kw, kb = jax.random.split(key, 3)
        bound = 1.0 / (fan_in ** 0.5)
        w = jax.random.uniform(kw, (fan_in, fan_out), jnp.float32, -bound, bound)
        b = jax.random.uniform(kb, (1, fan_out), jnp.float32, -bound, bound)
        params.append((w, b))
    return params


def reference_forward(x, params):
    """Plain-JAX reference matching the PyTorch forward."""
    h = x
    for i, (w, b) in enumerate(params):
        h = h @ w + b
        if i < len(params) - 1:
            h = jnp.maximum(h, 0.0)
    return h


if __name__ == "__main__":
    input_size, hidden_size, output_size = 16, 32, 4
    batch = 8

    key = jax.random.PRNGKey(0)
    key, kx = jax.random.split(key)
    x = jax.random.normal(kx, (batch, input_size), jnp.float32)

    params = init_params(key, input_size, hidden_size, output_size)

    # Pack parameters ONCE (hoisted out of the per-call path), then call the
    # jitted wrapper; padding + pallas_call + output slice fuse into one dispatch.
    p_packed = jax.block_until_ready(_pack_params(params))

    out = neural_network_forward(x, p_packed, output_size=output_size)
    out = jax.block_until_ready(out)

    ref = reference_forward(x, params)
    assert out.shape == (batch, output_size)
    assert jnp.allclose(out, ref, atol=1e-5, rtol=1e-5), "mismatch vs reference"

    print("KERNEL_OK")
</pallas_src>

<mosaic_0001>
module attributes {stable_mosaic.version = 11 : i64} {
  func.func @_mlp_kernel(%arg0: i32, %arg1: memref<8x16xf32, #tpu.memory_space<vmem>>, %arg2: memref<648x128xf32, #tpu.memory_space<vmem>>, %arg3: memref<8x4xf32, #tpu.memory_space<vmem>>) attributes {dimension_semantics = [#tpu.dimension_semantics<parallel>], iteration_bounds = array<i64: 1>, scalar_prefetch = 0 : i64, scratch_operands = 0 : i64, tpu.core_type = #tpu.core_type<tc>, window_params = [{transform_indices = @transform_0, window_bounds = array<i64: 8, 16>}, {pipeline_mode = #tpu.pipeline_mode<synchronous>, transform_indices = @transform_1, window_bounds = array<i64: 648, 128>}, {transform_indices = @transform_2, window_bounds = array<i64: 8, 4>}]} {
    %c0 = arith.constant 0 : index
    %c0_0 = arith.constant 0 : index
    %0 = vector.load %arg1[%c0, %c0_0] : memref<8x16xf32, #tpu.memory_space<vmem>>, vector<8x16xf32>
    %c0_1 = arith.constant 0 : index
    %c0_2 = arith.constant 0 : index
    %1 = vector.load %arg2[%c0_1, %c0_2] : memref<648x128xf32, #tpu.memory_space<vmem>>, vector<16x128xf32>
    %c640 = arith.constant 640 : index
    %c0_3 = arith.constant 0 : index
    %2 = vector.load %arg2[%c640, %c0_3] : memref<648x128xf32, #tpu.memory_space<vmem>>, vector<1x128xf32>
    %cst = arith.constant dense<0.000000e+00> : vector<8x128xf32>
    %3 = tpu.matmul %0, %1, %cst {dimension_numbers = #tpu.dot_dimension_numbers<[1], [0], [0], [1], [0, 0, 1, 1], [], []>} : vector<8x16xf32>, vector<16x128xf32>, vector<8x128xf32> -> vector<8x128xf32>
    %4 = vector.broadcast %2 : vector<1x128xf32> to vector<8x128xf32>
    %5 = arith.addf %3, %4 : vector<8x128xf32>
    %cst_4 = arith.constant 0.000000e+00 : f32
    %6 = vector.broadcast %cst_4 : f32 to vector<8x128xf32>
    %7 = arith.maximumf %5, %6 : vector<8x128xf32>
    %c128 = arith.constant 128 : index
    %c0_5 = arith.constant 0 : index
    %8 = vector.load %arg2[%c128, %c0_5] : memref<648x128xf32, #tpu.memory_space<vmem>>, vector<128x128xf32>
    %c641 = arith.constant 641 : index
    %c0_6 = arith.constant 0 : index
    %9 = vector.load %arg2[%c641, %c0_6] : memref<648x128xf32, #tpu.memory_space<vmem>>, vector<1x128xf32>
    %cst_7 = arith.constant dense<0.000000e+00> : vector<8x128xf32>
    %10 = tpu.matmul %7, %8, %cst_7 {dimension_numbers = #tpu.dot_dimension_numbers<[1], [0], [0], [1], [0, 0, 1, 1], [], []>} : vector<8x128xf32>, vector<128x128xf32>, vector<8x128xf32> -> vector<8x128xf32>
    %11 = vector.broadcast %9 : vector<1x128xf32> to vector<8x128xf32>
    %12 = arith.addf %10, %11 : vector<8x128xf32>
    %cst_8 = arith.constant 0.000000e+00 : f32
    %13 = vector.broadcast %cst_8 : f32 to vector<8x128xf32>
    %14 = arith.maximumf %12, %13 : vector<8x128xf32>
    %c256 = arith.constant 256 : index
    %c0_9 = arith.constant 0 : index
    %15 = vector.load %arg2[%c256, %c0_9] : memref<648x128xf32, #tpu.memory_space<vmem>>, vector<128x128xf32>
    %c642 = arith.constant 642 : index
    %c0_10 = arith.constant 0 : index
    %16 = vector.load %arg2[%c642, %c0_10] : memref<648x128xf32, #tpu.memory_space<vmem>>, vector<1x128xf32>
    %cst_11 = arith.constant dense<0.000000e+00> : vector<8x128xf32>
    %17 = tpu.matmul %14, %15, %cst_11 {dimension_numbers = #tpu.dot_dimension_numbers<[1], [0], [0], [1], [0, 0, 1, 1], [], []>} : vector<8x128xf32>, vector<128x128xf32>, vector<8x128xf32> -> vector<8x128xf32>
    %18 = vector.broadcast %16 : vector<1x128xf32> to vector<8x128xf32>
    %19 = arith.addf %17, %18 : vector<8x128xf32>
    %cst_12 = arith.constant 0.000000e+00 : f32
    %20 = vector.broadcast %cst_12 : f32 to vector<8x128xf32>
    %21 = arith.maximumf %19, %20 : vector<8x128xf32>
    %c384 = arith.constant 384 : index
    %c0_13 = arith.constant 0 : index
    %22 = vector.load %arg2[%c384, %c0_13] : memref<648x128xf32, #tpu.memory_space<vmem>>, vector<128x128xf32>
    %c643 = arith.constant 643 : index
    %c0_14 = arith.constant 0 : index
    %23 = vector.load %arg2[%c643, %c0_14] : memref<648x128xf32, #tpu.memory_space<vmem>>, vector<1x128xf32>
    %cst_15 = arith.constant dense<0.000000e+00> : vector<8x128xf32>
    %24 = tpu.matmul %21, %22, %cst_15 {dimension_numbers = #tpu.dot_dimension_numbers<[1], [0], [0], [1], [0, 0, 1, 1], [], []>} : vector<8x128xf32>, vector<128x128xf32>, vector<8x128xf32> -> vector<8x128xf32>
    %25 = vector.broadcast %23 : vector<1x128xf32> to vector<8x128xf32>
    %26 = arith.addf %24, %25 : vector<8x128xf32>
    %cst_16 = arith.constant 0.000000e+00 : f32
    %27 = vector.broadcast %cst_16 : f32 to vector<8x128xf32>
    %28 = arith.maximumf %26, %27 : vector<8x128xf32>
    %c512 = arith.constant 512 : index
    %c0_17 = arith.constant 0 : index
    %29 = vector.load %arg2[%c512, %c0_17] : memref<648x128xf32, #tpu.memory_space<vmem>>, vector<128x128xf32>
    %c644 = arith.constant 644 : index
    %c0_18 = arith.constant 0 : index
    %30 = vector.load %arg2[%c644, %c0_18] : memref<648x128xf32, #tpu.memory_space<vmem>>, vector<1x128xf32>
    %cst_19 = arith.constant dense<0.000000e+00> : vector<8x128xf32>
    %31 = tpu.matmul %28, %29, %cst_19 {dimension_numbers = #tpu.dot_dimension_numbers<[1], [0], [0], [1], [0, 0, 1, 1], [], []>} : vector<8x128xf32>, vector<128x128xf32>, vector<8x128xf32> -> vector<8x128xf32>
    %32 = vector.broadcast %30 : vector<1x128xf32> to vector<8x128xf32>
    %33 = arith.addf %31, %32 : vector<8x128xf32>
    %cst_20 = arith.constant 0.000000e+00 : f32
    %34 = vector.broadcast %cst_20 : f32 to vector<8x128xf32>
    %35 = arith.maximumf %33, %34 : vector<8x128xf32>
    %c645 = arith.constant 645 : index
    %c0_21 = arith.constant 0 : index
    %36 = vector.load %arg2[%c645, %c0_21] : memref<648x128xf32, #tpu.memory_space<vmem>>, vector<1x128xf32>
    %c646 = arith.constant 646 : index
    %c0_22 = arith.constant 0 : index
    %37 = vector.load %arg2[%c646, %c0_22] : memref<648x128xf32, #tpu.memory_space<vmem>>, vector<1x128xf32>
    %38 = vector.broadcast %36 : vector<1x128xf32> to vector<8x128xf32>
    %39 = arith.mulf %35, %38 : vector<8x128xf32>
    %40 = vector.broadcast %37 : vector<1x128xf32> to vector<8x128xf32>
    %41 = arith.addf %39, %40 : vector<8x128xf32>
    %42 = vector.extract_strided_slice %41 {offsets = [0, 0], sizes = [8, 4], strides = [1, 1]} : vector<8x128xf32> to vector<8x4xf32>
    %c0_23 = arith.constant 0 : index
    %c0_24 = arith.constant 0 : index
    %43 = vector.load %arg3[%c0_23, %c0_24] : memref<8x4xf32, #tpu.memory_space<vmem>>, vector<8x4xf32>
    tpu.vector_store %arg3[%c0_23, %c0_24], %42 {strides = array<i32>} : memref<8x4xf32, #tpu.memory_space<vmem>>, vector<8x4xf32>,
    return
  }
  func.func @transform_0(%arg0: i32) -> (i32, i32) {
    %c0_i32 = arith.constant 0 : i32
    %c0_i32_0 = arith.constant 0 : i32
    return %arg0, %c0_i32 : i32, i32
  }
  func.func @transform_1(%arg0: i32) -> (i32, i32) {
    %c0_i32 = arith.constant 0 : i32
    %c0_i32_0 = arith.constant 0 : i32
    %c0_i32_1 = arith.constant 0 : i32
    return %c0_i32, %c0_i32_0 : i32, i32
  }
  func.func @transform_2(%arg0: i32) -> (i32, i32) {
    %c0_i32 = arith.constant 0 : i32
    %c0_i32_0 = arith.constant 0 : i32
    return %arg0, %c0_i32 : i32, i32
  }
}

</mosaic_0001>

<bundles_post_ra>
// kernel: neural_network_forward.1
= control target key start
LH: loop header
LB: loop body
LE: loop exit
PB: predicated region body
PF: predicated region fallthrough
CT: control target
= control target key end

     0   :  { %7 = vsyncpa [#allocation3], 0  ;;  %s987_s0 = inlined_call_operand.hbm [shape: f32[8,16], index: 0, kind: input, shape index: {}]   ;;  %s988_s1 = inlined_call_operand.hbm [shape: f32[648,128], index: 1, kind: input, shape index: {}]   ;;  %s989_s2 = inlined_call_operand.vmem [shape: f32[8,4], index: 2, kind: output, shape index: {}]  }
   0x1   :  { %8 = vsyncpa [#allocation5], 0  ;;  %s888_s9 = smov [#allocation2]   ;;  %s889_s11 = smov [#allocation4]  }
   0x2   :  { %s15_s10 = sshll.u32 %s888_s9, 4  ;;  %s24_s12 = sshll.u32 %s889_s11, 4  ;;  %s16_s10 = int_to_ptr.vmem [resolvable:$true] %s15_s10  ;;  %s910_s12 = int_to_ptr.vmem [resolvable:$true] %s24_s12 }
   0x3   :  { %s840_s15 = scalar_lea.hbm %s987_s0, 128 }
   0x4   :  { %p841_p0 = scmp.ne.s32.totalorder %s987_s0, %s840_s15  ;;  %p844_p1 = scmp.lt.u32.totalorder %s840_s15, %s987_s0 }
   0x6   :  { %p846_p2 = pnand %p844_p1, %p841_p0 }
   0x8   :  { %849 = shalt.err (!%p846_p2)
}
   0x9   :  { %s850_s20 = scalar_lea.vmem %s16_s10, 128  ;;  %p855_p4 = scmp.lt.s32.totalorder %s16_s10, %s16_s10 }
   0xa   :  { %p851_p3 = scmp.ne.s32.totalorder %s16_s10, %s850_s20  ;;  %p856_p5 = scmp.lt.s32.totalorder %s850_s20, %s850_s20 }
   0xc   :  { %p857_p6 = por %p856_p5, %p855_p4 }
   0xe   :  { %p858_p7 = pnand %p857_p6, %p851_p3 }
  0x10   :  { %861 = shalt.err (!%p858_p7)
}
  0x11   :  { %18 = dma.hbm_to_vmem [thread:$0]  %s987_s0, 128, %s16_s10, [#allocation3]  }
  0x12   :  { %s862_s25 = scalar_lea.hbm %s988_s1, 10368 }
  0x13   :  { %p863_p8 = scmp.ne.s32.totalorder %s988_s1, %s862_s25  ;;  %p866_p9 = scmp.lt.u32.totalorder %s862_s25, %s988_s1 }
  0x15   :  { %p868_p10 = pnand %p866_p9, %p863_p8 }
  0x17   :  { %871 = shalt.err (!%p868_p10)
}
  0x18   :  { %s872_s30 = scalar_lea.vmem %s910_s12, 10368  ;;  %p877_p12 = scmp.lt.s32.totalorder %s910_s12, %s910_s12 }
  0x19   :  { %p873_p11 = scmp.ne.s32.totalorder %s910_s12, %s872_s30  ;;  %p878_p13 = scmp.lt.s32.totalorder %s872_s30, %s872_s30 }
  0x1b   :  { %p879_p0 = por %p878_p13, %p877_p12 }
  0x1d   :  { %p880_p1 = pnand %p879_p0, %p873_p11 }
  0x1f   :  { %883 = shalt.err (!%p880_p1)
}
  0x20   :  { %s890_s0 = smov 128   ;;  %s891_s3 = smov 8  }
  0x21   :  { %30 = dma.hbm_to_vmem [thread:$0]  %s988_s1, 10368, %s910_s12, [#allocation5], %s890_s0, %s890_s0, %s891_s3  }
  0x22   :  { %884 = dma.done.wait [#allocation3], 128  }
  0x23   :  { %885 = vsyncadd [#allocation3], 4294967168 }
  0x24   :  { %886 = dma.done.wait [#allocation5], 10368  }
  0x25   :  { %887 = vsyncadd [#allocation5], 4294956928  ;;  %v892_v0 = vmov 0.0|0.0   ;;  %vm893_vm0 = vmmov 0   ;;  %v894_v1 = vmov 0.0   ;;  %v38_v2 = vld [vmem:[#allocation4] sm:$0xff] }
  0x26   :  { %734 = vmatprep.subr.bf16.mxu0 %v892_v0  ;;  %591 = vmatprep.mubr.msk.f32.mxu0 %vm893_vm0, %v894_v1  ;;  %v39_v3 = vld [vmem:[#allocation4 + $0x8] sm:$0xff]  ;;  %v120_v5 = vld [vmem:[#allocation4 + $0x80] sm:$0xff]  ;;  %v122_v7 = vld [vmem:[#allocation4 + $0x90] sm:$0xff]  ;;  %vm45_vm1 = vcmask 130048   ;;  %vm500_vm2 = vcmask 31744  }
  0x27   :  { %737 = vmatprep.subr.bf16.mxu1 %v892_v0  ;;  %626 = vmatprep.mubr.msk.f32.mxu1 %vm893_vm0, %v894_v1  ;;  %v735_v4 = vpack.c.bf16 %v39_v3, %v38_v2  ;;  %v121_v6 = vld [vmem:[#allocation4 + $0x88] sm:$0xff]  ;;  %v123_v9 = vld [vmem:[#allocation4 + $0x98] sm:$0xff]  ;;  %v124_v12 = vld [vmem:[#allocation4 + $0xa0] sm:$0xff] }
  0x28   :  { %v738_v8 = vpack.c.bf16 %v121_v6, %v120_v5  ;;  %v37_v10 = vld [vmem:[#allocation2] sm:$0xff]  ;;  %v741_v11 = vpack.c.bf16 %v123_v9, %v122_v7  ;;  %v125_v13 = vld [vmem:[#allocation4 + $0xa8] sm:$0xff]  ;;  %v126_v15 = vld [vmem:[#allocation4 + $0xb0] sm:$0xff] }
  0x29   :  { %736 = vmatpush3.bf16.msra.mxu0 %v735_v4  ;;  %v744_v14 = vpack.c.bf16 %v125_v13, %v124_v12  ;;  %v127_v16 = vld [vmem:[#allocation4 + $0xb8] sm:$0xff]  ;;  %v128_v18 = vld [vmem:[#allocation4 + $0xc0] sm:$0xff]  ;;  %v129_v19 = vld [vmem:[#allocation4 + $0xc8] sm:$0xff] }
  0x2a   :  { %739 = vmatpush3.bf16.msra.mxu1 %v738_v8  ;;  %761 = vmatprep.subr.bf16.mxu0 %v892_v0  ;;  %v747_v17 = vpack.c.bf16 %v127_v16, %v126_v15  ;;  %v750_v20 = vpack.c.bf16 %v129_v19, %v128_v18  ;;  %v130_v21 = vld [vmem:[#allocation4 + $0xd0] sm:$0xff]  ;;  %v131_v22 = vld [vmem:[#allocation4 + $0xd8] sm:$0xff]  ;;  %v132_v24 = vld [vmem:[#allocation4 + $0xe0] sm:$0xff] }
  0x2b   :  { %740 = vmatprep.subr.bf16.mxu1 %v892_v0  ;;  %v753_v23 = vpack.c.bf16 %v131_v22, %v130_v21  ;;  %v133_v25 = vld [vmem:[#allocation4 + $0xe8] sm:$0xff]  ;;  %v134_v27 = vld [vmem:[#allocation4 + $0xf0] sm:$0xff]  ;;  %v135_v28 = vld [vmem:[#allocation4 + $0xf8] sm:$0xff] }
  0x2c   :  { %592 = vmatmul.mubr.msk.f32.vlgmr.msra.gmra.mrb[0].mxu0 %vm45_vm1, %v37_v10  ;;  %v756_v26 = vpack.c.bf16 %v133_v25, %v132_v24  ;;  %v759_v29 = vpack.c.bf16 %v135_v28, %v134_v27  ;;  %v212_v30 = vld [vmem:[#allocation4 + $0x100] sm:$0xff]  ;;  %v213_v31 = vld [vmem:[#allocation4 + $0x108] sm:$0xff]  ;;  %v214_v32 = vld [vmem:[#allocation4 + $0x110] sm:$0xff] }
  0x2d   :  { %661 = vmatprep.mubr.msk.f32.mxu0 %vm893_vm0, %v894_v1  ;;  %v762_v33 = vpack.c.bf16 %v213_v31, %v212_v30  ;;  %v215_v34 = vld [vmem:[#allocation4 + $0x118] sm:$0xff]  ;;  %v216_v36 = vld [vmem:[#allocation4 + $0x120] sm:$0xff]  ;;  %v217_v37 = vld [vmem:[#allocation4 + $0x128] sm:$0xff] }
  0x2e   :  { %742 = vmatpush3.bf16.msra.mxu1 %v741_v11  ;;  %v765_v35 = vpack.c.bf16 %v215_v34, %v214_v32  ;;  %v768_v38 = vpack.c.bf16 %v217_v37, %v216_v36  ;;  %v218_v39 = vld [vmem:[#allocation4 + $0x130] sm:$0xff]  ;;  %v219_v40 = vld [vmem:[#allocation4 + $0x138] sm:$0xff]  ;;  %v220_v42 = vld [vmem:[#allocation4 + $0x140] sm:$0xff] }
  0x2f   :  { %743 = vmatprep.subr.bf16.mxu1 %v892_v0  ;;  %763 = vmatpush3.bf16.msra.mxu0 %v762_v33  ;;  %v771_v41 = vpack.c.bf16 %v219_v40, %v218_v39  ;;  %v221_v43 = vld [vmem:[#allocation4 + $0x148] sm:$0xff]  ;;  %v222_v45 = vld [vmem:[#allocation4 + $0x150] sm:$0xff]  ;;  %v223_v46 = vld [vmem:[#allocation4 + $0x158] sm:$0xff] }
  0x30   :  { %764 = vmatprep.subr.bf16.mxu0 %v892_v0  ;;  %v774_v44 = vpack.c.bf16 %v221_v43, %v220_v42  ;;  %v777_v47 = vpack.c.bf16 %v223_v46, %v222_v45  ;;  %v224_v48 = vld [vmem:[#allocation4 + $0x160] sm:$0xff]  ;;  %v225_v49 = vld [vmem:[#allocation4 + $0x168] sm:$0xff]  ;;  %v226_v56 = vld [vmem:[#allocation4 + $0x170] sm:$0xff] }
  0x31   :  { %v780_v50 = vpack.c.bf16 %v225_v49, %v224_v48  ;;  %v508_v51 = vld [vmem:[#allocation4 + $0x280] ss:$0 sm:$0xff]  ;;  %v227_v57 = vld [vmem:[#allocation4 + $0x178] sm:$0xff]  ;;  %v305_v60 = vld [vmem:[#allocation4 + $0x188] sm:$0xff] }
  0x32   :  { %745 = vmatpush3.bf16.msra.mxu1 %v744_v14  ;;  %v783_v58 = vpack.c.bf16 %v227_v57, %v226_v56  ;;  %v304_v59 = vld [vmem:[#allocation4 + $0x180] sm:$0xff]  ;;  %v306_v61 = vld [vmem:[#allocation4 + $0x190] sm:$0xff]  ;;  %v307_v63 = vld [vmem:[#allocation4 + $0x198] sm:$0xff] }
  0x33   :  { %746 = vmatprep.subr.bf16.mxu1 %v892_v0  ;;  %766 = vmatpush3.bf16.msra.mxu0 %v765_v35  ;;  %v786_v62 = vpack.c.bf16 %v305_v60, %v304_v59  ;;  %v789_v2 = vpack.c.bf16 %v307_v63, %v306_v61  ;;  %v308_v3 = vld [vmem:[#allocation4 + $0x1a0] sm:$0xff]  ;;  %v309_v4 = vld [vmem:[#allocation4 + $0x1a8] sm:$0xff]  ;;  %v310_v6 = vld [vmem:[#allocation4 + $0x1b0] sm:$0xff] }
  0x34   :  { %767 = vmatprep.subr.bf16.mxu0 %v892_v0  ;;  %v792_v5 = vpack.c.bf16 %v309_v4, %v308_v3  ;;  %v311_v7 = vld [vmem:[#allocation4 + $0x1b8] sm:$0xff]  ;;  %v312_v9 = vld [vmem:[#allocation4 + $0x1c0] sm:$0xff]  ;;  %v313_v10 = vld [vmem:[#allocation4 + $0x1c8] sm:$0xff] }
  0x35   :  { %v795_v8 = vpack.c.bf16 %v311_v7, %v310_v6  ;;  %v798_v11 = vpack.c.bf16 %v313_v10, %v312_v9  ;;  %v314_v12 = vld [vmem:[#allocation4 + $0x1d0] sm:$0xff]  ;;  %v315_v13 = vld [vmem:[#allocation4 + $0x1d8] sm:$0xff]  ;;  %v316_v15 = vld [vmem:[#allocation4 + $0x1e0] sm:$0xff] }
  0x36   :  { %748 = vmatpush3.bf16.msra.mxu1 %v747_v17  ;;  %v801_v14 = vpack.c.bf16 %v315_v13, %v314_v12  ;;  %v317_v16 = vld [vmem:[#allocation4 + $0x1e8] sm:$0xff]  ;;  %v510_v18 = vld [vmem:[#allocation4 + $0x281] ss:$0 sm:$0xff]  ;;  %v319_v24 = vld [vmem:[#allocation4 + $0x1f8] sm:$0xff] }
  0x37   :  { %749 = vmatprep.subr.bf16.mxu1 %v892_v0  ;;  %769 = vmatpush3.bf16.msra.mxu0 %v768_v38  ;;  %v804_v17 = vpack.c.bf16 %v317_v16, %v316_v15  ;;  %v397_v27 = vld [vmem:[#allocation4 + $0x208] sm:$0xff]  ;;  %v398_v28 = vld [vmem:[#allocation4 + $0x210] sm:$0xff]  ;;  %v399_v30 = vld [vmem:[#allocation4 + $0x218] sm:$0xff] }
  0x38   :  { %770 = vmatprep.subr.bf16.mxu0 %v892_v0  ;;  %v813_v31 = vpack.c.bf16 %v399_v30, %v398_v28  ;;  %v400_v32 = vld [vmem:[#allocation4 + $0x220] sm:$0xff]  ;;  %v401_v33 = vld [vmem:[#allocation4 + $0x228] sm:$0xff]  ;;  %v403_v35 = vld [vmem:[#allocation4 + $0x238] sm:$0xff] }
  0x39   :  { %v816_v34 = vpack.c.bf16 %v401_v33, %v400_v32  ;;  %v404_v37 = vld [vmem:[#allocation4 + $0x240] sm:$0xff]  ;;  %v405_v38 = vld [vmem:[#allocation4 + $0x248] sm:$0xff]  ;;  %v406_v40 = vld [vmem:[#allocation4 + $0x250] sm:$0xff] }
  0x3a   :  { %751 = vmatpush3.bf16.msra.mxu1 %v750_v20  ;;  %v822_v39 = vpack.c.bf16 %v405_v38, %v404_v37  ;;  %v408_v43 = vld [vmem:[#allocation4 + $0x260] sm:$0xff] }
  0x3b   :  { %752 = vmatprep.subr.bf16.mxu1 %v892_v0  ;;  %772 = vmatpush3.bf16.msra.mxu0 %v771_v41  ;;  %v407_v41 = vld [vmem:[#allocation4 + $0x258] sm:$0xff]  ;;  %v511_v46 = vld [vmem:[#allocation4 + $0x282] ss:$0 sm:$0xff]  ;;  %v513_v59 = vld [vmem:[#allocation4 + $0x284] ss:$0 sm:$0xff] }
  0x3c   :  { %773 = vmatprep.subr.bf16.mxu0 %v892_v0  ;;  %v825_v42 = vpack.c.bf16 %v407_v41, %v406_v40 }
  0x3e   :  { %754 = vmatpush3.bf16.msra.mxu1 %v753_v23  ;;  %v318_v23 = vld [vmem:[#allocation4 + $0x1f0] sm:$0xff] }
  0x3f   :  { %755 = vmatprep.subr.bf16.mxu1 %v892_v0  ;;  %775 = vmatpush3.bf16.msra.mxu0 %v774_v44  ;;  %v807_v25 = vpack.c.bf16 %v319_v24, %v318_v23  ;;  %v409_v44 = vld [vmem:[#allocation4 + $0x268] sm:$0xff] }
  0x40   :  { %776 = vmatprep.subr.bf16.mxu0 %v892_v0  ;;  %v828_v45 = vpack.c.bf16 %v409_v44, %v408_v43 }
  0x42   :  { %757 = vmatpush3.bf16.msra.mxu1 %v756_v26  ;;  %v396_v26 = vld [vmem:[#allocation4 + $0x200] sm:$0xff] }
  0x43   :  { %758 = vmatprep.subr.bf16.mxu1 %v892_v0  ;;  %778 = vmatpush3.bf16.msra.mxu0 %v777_v47 }
  0x44   :  { %779 = vmatprep.subr.bf16.mxu0 %v892_v0 }
  0x46   :  { %760 = vmatpush3.bf16.msra.mxu1 %v759_v29  ;;  %v810_v29 = vpack.c.bf16 %v397_v27, %v396_v26 }
  0x47   :  { %785 = vmatprep.subr.bf16.mxu1 %v892_v0  ;;  %781 = vmatpush3.bf16.msra.mxu0 %v780_v50 }
  0x48   :  { %782 = vmatprep.subr.bf16.mxu0 %v892_v0 }
  0x4b   :  { %784 = vmatpush3.bf16.msra.mxu0 %v783_v58 }
  0x4c   :  { %809 = vmatprep.subr.bf16.mxu0 %v892_v0 }
  0xff   :  { %v115_v52 = vpop.f32.mrb[0].mxu0 }
 0x100   :  { %v116_v53 = vadd.f32 %v508_v51, %v115_v52  ;;  %v593_v54 = vpop.f32.mrb[1].mxu0  ;;  %v410_v51 = vld [vmem:[#allocation4 + $0x270] sm:$0xff]  ;;  %v411_v52 = vld [vmem:[#allocation4 + $0x278] sm:$0xff] }
 0x101   :  { %v512_v54 = vld [vmem:[#allocation4 + $0x283] ss:$0 sm:$0xff] }
 0x102   :  { %v119_v55 = vmax.f32 %v116_v53, 0.0  ;;  %v831_v53 = vpack.c.bf16 %v411_v52, %v410_v51 }
 0x104   :  { %627 = vmatmul.mubr.f32.vlgmr.msra.gmra.mrb[0].mxu1 %v119_v55 }
 0x105   :  { %696 = vmatprep.mubr.msk.f32.mxu1 %vm893_vm0, %v894_v1  ;;  %787 = vmatpush3.bf16.msra.mxu1 %v786_v62  ;;  %v514_v62 = vld [vmem:[#allocation4 + $0x285] ss:$0 sm:$0xff] }
 0x106   :  { %788 = vmatprep.subr.bf16.mxu1 %v892_v0 }
 0x109   :  { %790 = vmatpush3.bf16.msra.mxu1 %v789_v2  ;;  %v515_v2 = vld [vmem:[#allocation4 + $0x286] ss:$0 sm:$0xff] }
 0x10a   :  { %791 = vmatprep.subr.bf16.mxu1 %v892_v0 }
 0x10d   :  { %793 = vmatpush3.bf16.msra.mxu1 %v792_v5 }
 0x10e   :  { %794 = vmatprep.subr.bf16.mxu1 %v892_v0 }
 0x111   :  { %796 = vmatpush3.bf16.msra.mxu1 %v795_v8 }
 0x112   :  { %797 = vmatprep.subr.bf16.mxu1 %v892_v0 }
 0x115   :  { %799 = vmatpush3.bf16.msra.mxu1 %v798_v11 }
 0x116   :  { %800 = vmatprep.subr.bf16.mxu1 %v892_v0 }
 0x119   :  { %802 = vmatpush3.bf16.msra.mxu1 %v801_v14 }
 0x11a   :  { %803 = vmatprep.subr.bf16.mxu1 %v892_v0 }
 0x11d   :  { %805 = vmatpush3.bf16.msra.mxu1 %v804_v17 }
 0x11e   :  { %806 = vmatprep.subr.bf16.mxu1 %v892_v0 }
 0x121   :  { %808 = vmatpush3.bf16.msra.mxu1 %v807_v25 }
 0x1d7   :  { %v207_v19 = vpop.f32.mrb[0].mxu1 }
 0x1d8   :  { %v208_v20 = vadd.f32 %v510_v18, %v207_v19  ;;  %v628_v21 = vpop.f32.mrb[1].mxu1 }
 0x1da   :  { %v211_v22 = vmax.f32 %v208_v20, 0.0 }
 0x1dc   :  { %662 = vmatmul.mubr.f32.vlgmr.msra.gmra.mrb[2].mxu0 %v211_v22 }
 0x1dd   :  { %731 = vmatprep.mubr.msk.f32.mxu0 %vm893_vm0, %v894_v1  ;;  %811 = vmatpush3.bf16.msra.mxu0 %v810_v29  ;;  %v402_v1 = vld [vmem:[#allocation4 + $0x230] sm:$0xff] }
 0x1de   :  { %812 = vmatprep.subr.bf16.mxu0 %v892_v0  ;;  %v819_v36 = vpack.c.bf16 %v403_v35, %v402_v1 }
 0x1e1   :  { %814 = vmatpush3.bf16.msra.mxu0 %v813_v31 }
 0x1e2   :  { %815 = vmatprep.subr.bf16.mxu0 %v892_v0 }
 0x1e5   :  { %817 = vmatpush3.bf16.msra.mxu0 %v816_v34 }
 0x1e6   :  { %818 = vmatprep.subr.bf16.mxu0 %v892_v0 }
 0x1e9   :  { %820 = vmatpush3.bf16.msra.mxu0 %v819_v36 }
 0x1ea   :  { %821 = vmatprep.subr.bf16.mxu0 %v892_v0 }
 0x1ed   :  { %823 = vmatpush3.bf16.msra.mxu0 %v822_v39 }
 0x1ee   :  { %824 = vmatprep.subr.bf16.mxu0 %v892_v0 }
 0x1f1   :  { %826 = vmatpush3.bf16.msra.mxu0 %v825_v42 }
 0x1f2   :  { %827 = vmatprep.subr.bf16.mxu0 %v892_v0 }
 0x1f5   :  { %829 = vmatpush3.bf16.msra.mxu0 %v828_v45 }
 0x1f6   :  { %830 = vmatprep.subr.bf16.mxu0 %v892_v0 }
 0x1f9   :  { %832 = vmatpush3.bf16.msra.mxu0 %v831_v53 }
 0x2af   :  { %v299_v47 = vpop.f32.mrb[2].mxu0 }
 0x2b0   :  { %v300_v48 = vadd.f32 %v511_v46, %v299_v47  ;;  %v663_v49 = vpop.f32.mrb[3].mxu0 }
 0x2b2   :  { %v303_v50 = vmax.f32 %v300_v48, 0.0 }
 0x2b4   :  { %697 = vmatmul.mubr.f32.vlgmr.msra.gmra.mrb[2].mxu1 %v303_v50 }
 0x387   :  { %v391_v55 = vpop.f32.mrb[2].mxu1 }
 0x388   :  { %v392_v56 = vadd.f32 %v512_v54, %v391_v55  ;;  %v698_v57 = vpop.f32.mrb[3].mxu1 }
 0x38a   :  { %v395_v58 = vmax.f32 %v392_v56, 0.0 }
 0x38c   :  { %732 = vmatmul.mubr.f32.vlgmr.msra.gmra.mrb[4].mxu0 %v395_v58 }
 0x45f   :  { %v483_v60 = vpop.f32.mrb[4].mxu0 }
 0x460   :  { %v484_v61 = vadd.f32 %v513_v59, %v483_v60  ;;  %v733_v0 = vpop.f32.mrb[5].mxu0 }
 0x462   :  { %v487_v63 = vmax.f32 %v484_v61, 0.0 }
 0x464   :  { %v494_v3 = vmul.f32 %v514_v62, %v487_v63 }
 0x466   :  { %v499_v4 = vadd.f32 %v515_v2, %v494_v3 }
 0x468   :  { %501 = vst.msk [vmem:[%s989_s2] sm:$0xff] %vm500_vm2, %v499_v4 }
 0x469   :  { %506 = vsyncpa [#allocation3], 1 }
 0x46a   :  { %507 = vsyncpa [#allocation5], 1 }

</bundles_post_ra>
